<compile_context>
chip_gen: v7x
topology: tpu7x:2x2x1
jax: 0.10.0
libtpu: 0.0.40
codegen_flags: <defaults>
</compile_context>

<pallas_src>
import jax
import jax.numpy as jnp
from jax.experimental import pallas as pl
from jax.experimental.pallas import tpu as pltpu

ALL_LEVELS = ["phylum", "class", "order", "family", "genus", "species", "leaf"]

_LANES = 128
# ~4 MiB per input block -> 2 inputs x 2 pipeline buffers ~= 16 MiB, inside the
# scoped-VMEM budgets of v5e (16 MiB default, raised explicitly below), v6e and
# v7x (32 MiB default / 64 MiB physical).
_PER_INPUT_BLOCK_BYTES = 4 * 1024 * 1024


def _plan_tiling(M, itemsize, is_16bit):
    """Pick (M_pad, rows, tile_rows) for a lane-dense [rows, 128] view of M elems."""
    cap_rows = max(8, _PER_INPUT_BLOCK_BYTES // (_LANES * itemsize))

    def pick(rows):
        if rows <= cap_rows:
            return rows  # single full-extent block: always a legal BlockSpec
        # Need an exact divisor that is a multiple of 8 (16 preferred for bf16
        # so packed sublane pairs stay whole).
        steps = (16, 8) if is_16bit else (8,)
        for step in steps:
            d = (cap_rows // step) * step
            while d >= step:
                if rows % d == 0:
                    return d
                d -= step
        return None

    if M % _LANES == 0:
        rows = M // _LANES
        t = pick(rows)
        if t is not None:
            return M, rows, t
    # Pad to a multiple of 1024 (= 8*128) so rows % 8 == 0 and tile_rows=8
    # always divides as a last resort.
    M_pad = ((M + 1023) // 1024) * 1024
    rows = M_pad // _LANES
    t = pick(rows)
    return M_pad, rows, (t if t is not None else 8)


def _sq_err_partial_kernel(sel_ref, pred_ref, tgt_ref, out_ref):
    """One (tile_rows, 128) tile of one level -> lane-dense (1, 128) partial SSE."""
    del sel_ref  # only used by the BlockSpec index_maps
    d = pred_ref[...].astype(jnp.float32) - tgt_ref[...].astype(jnp.float32)
    # Sublane-only reduce (mostly VPU vreg adds); the cheap cross-lane and
    # cross-tile reductions are deferred to the wrapper.
    out_ref[...] = jnp.sum(d * d, axis=0, keepdims=True)


def _per_level_sq_err_sums(preds3, tgts3, sel, tile_rows):
    """Per-level sum of squared errors. preds3: (L, rows, 128), tgts3: (L_all, rows, 128)."""
    L, rows, lanes = preds3.shape
    assert lanes == _LANES and rows % tile_rows == 0, (preds3.shape, tile_rows)
    n_tiles = rows // tile_rows

    pred_block = tile_rows * _LANES * preds3.dtype.itemsize
    tgt_block = tile_rows * _LANES * tgts3.dtype.itemsize
    # 2 pipeline buffers per input + headroom; stay <= 48 MiB for v7x's 64 MiB VMEM.
    vmem_limit = int(min(max(2 * (pred_block + tgt_block) + (8 << 20), 32 << 20),
                         48 << 20))
    bytes_accessed = (L * rows * _LANES * (preds3.dtype.itemsize
                                           + tgts3.dtype.itemsize)
                      + L * n_tiles * _LANES * 4)

    partials = pl.pallas_call(
        _sq_err_partial_kernel,
        out_shape=jax.ShapeDtypeStruct((L, n_tiles, 1, _LANES), jnp.float32),
        grid_spec=pltpu.PrefetchScalarGridSpec(
            num_scalar_prefetch=1,
            grid=(L, n_tiles),
            in_specs=[
                pl.BlockSpec((None, tile_rows, _LANES),
                             lambda l, t, sel: (l, t, 0)),
                # Level selection straight from SMEM-prefetched indices: no
                # jnp.take / extra HBM copy of targets.
                pl.BlockSpec((None, tile_rows, _LANES),
                             lambda l, t, sel: (sel[l], t, 0)),
            ],
            out_specs=pl.BlockSpec((None, None, 1, _LANES),
                                   lambda l, t, sel: (l, t, 0, 0)),
        ),
        compiler_params=pltpu.CompilerParams(
            dimension_semantics=("parallel", "parallel"),
            vmem_limit_bytes=vmem_limit),
        cost_estimate=pl.CostEstimate(
            flops=3 * L * rows * _LANES,
            transcendentals=0,
            bytes_accessed=int(bytes_accessed)),
    )(sel, preds3, tgts3)

    return jnp.sum(partials, axis=(1, 2, 3))  # (L,) per-level SSE


def mse_per_rank(outputs, targets, selected_levels=None, all_levels=None,
                 tile_rows=None):
    """JAX/Pallas equivalent of MSEPerRank.forward (class_percentages=None).

    Args:
      outputs: list of length L of (N, C) arrays, OR an already-stacked
        (L, N, C) array (preferred: avoids the jnp.stack HBM copy).
      targets: (L_all, N, C) array indexed by level along axis 0.
      selected_levels: optional list of level names (default: all levels).
      tile_rows: optional override of the row-tile size of the [rows,128] view.
    """
    if all_levels is None:
        all_levels = ALL_LEVELS
    if not selected_levels:
        selected_levels = all_levels
    level2idx = {lvl: i for i, lvl in enumerate(all_levels)}
    sel_idx = [level2idx[lvl] for lvl in selected_levels]

    if isinstance(outputs, (list, tuple)):
        # TODO(synk): stacking a Python list materializes one extra HBM copy of
        # the predictions; pass a pre-stacked (L, N, C) slab to avoid it.
        preds = jnp.stack(list(outputs), axis=0)
    else:
        preds = jnp.asarray(outputs)
        if preds.ndim == 2:            # single softmax layer, like PyTorch's
            preds = preds[None]        # `if not isinstance(outputs, list)`
    L, N, C = preds.shape
    if L > len(sel_idx):
        raise ValueError(
            f"got {L} outputs but only {len(sel_idx)} selected levels")
    sel_idx = sel_idx[:L]  # PyTorch iterates over outputs; extra levels unused

    # TODO(synk): the class_percentages/weights branch of the original module
    # (flattened loss * per-class weights, then sum) is not implemented; only
    # the default unweighted mean path is.

    L_all = targets.shape[0]
    assert targets.shape[1:] == (N, C), (targets.shape, (N, C))

    # Lane-dense [rows, 128] view of each level's N*C elements.
    M = N * C
    itemsize = max(preds.dtype.itemsize, targets.dtype.itemsize)
    is16 = itemsize <= 2
    M_pad, rows, auto_tile = _plan_tiling(M, itemsize, is16)
    if tile_rows is None:
        tile_rows = auto_tile
    assert rows % tile_rows == 0 and (tile_rows % 8 == 0 or tile_rows == rows), \
        (rows, tile_rows)

    preds_flat = preds.reshape(L, M)
    tgts_flat = targets.reshape(L_all, M)
    if M_pad != M:
        # TODO(synk): this zero-pad materializes a copy; it is only taken when
        # N*C is not a multiple of 128. Zeros contribute 0 to the squared error
        # and the mean denominator below stays the original N*C.
        preds_flat = jnp.pad(preds_flat, ((0, 0), (0, M_pad - M)))
        tgts_flat = jnp.pad(tgts_flat, ((0, 0), (0, M_pad - M)))
    preds3 = preds_flat.reshape(L, rows, _LANES)
    tgts3 = tgts_flat.reshape(L_all, rows, _LANES)

    sel = jnp.asarray(sel_idx, jnp.int32)
    per_level_sums = _per_level_sq_err_sums(preds3, tgts3, sel, tile_rows)  # (L,)

    # Per-level mean, then average over levels (exact mean-of-means semantics).
    per_level_mean = per_level_sums / jnp.float32(M)
    return jnp.sum(per_level_mean) / jnp.float32(L)


if __name__ == "__main__":
    key = jax.random.PRNGKey(0)
    L = len(ALL_LEVELS)  # 7 softmax layers

    # --- Test 1: f32, all levels, single-tile lane-dense path (N*C = 128). ---
    N, C = 8, 16
    k_out, k_tgt, k2, k3, k4 = jax.random.split(key, 5)
    out_keys = jax.random.split(k_out, L)
    outputs = [jax.random.uniform(out_keys[i], (N, C), dtype=jnp.float32)
               for i in range(L)]
    targets = jax.random.uniform(k_tgt, (L, N, C), dtype=jnp.float32)
    loss = jax.block_until_ready(mse_per_rank(outputs, targets))
    ref = jnp.mean(jnp.stack(
        [jnp.mean((outputs[i] - targets[i]) ** 2) for i in range(L)]))
    assert jnp.allclose(loss, ref, rtol=1e-5, atol=1e-6), (loss, ref)

    # --- Test 2: bf16 inputs (bf16 on DMA, f32 on VPU). ---
    N2 = 32
    ko, kt = jax.random.split(k2)
    ok2 = jax.random.split(ko, L)
    outputs2 = [jax.random.uniform(ok2[i], (N2, C), dtype=jnp.bfloat16)
                for i in range(L)]
    targets2 = jax.random.uniform(kt, (L, N2, C), dtype=jnp.bfloat16)
    loss2 = jax.block_until_ready(mse_per_rank(outputs2, targets2))
    ref2 = jnp.mean(jnp.stack([
        jnp.mean((outputs2[i].astype(jnp.float32)
                  - targets2[i].astype(jnp.float32)) ** 2) for i in range(L)]))
    assert jnp.allclose(loss2, ref2, rtol=1e-4, atol=1e-5), (loss2, ref2)

    # --- Test 3: multi-tile reduction path + selected-levels subset + ---
    # --- pre-stacked predictions (exercises sel[l] != l scalar prefetch). ---
    sel_levels = ["class", "genus", "leaf"]
    N3 = 128  # N*C = 2048 -> rows = 16, forced tile_rows = 8 -> 2 tiles/level
    ko3, kt3 = jax.random.split(k3)
    preds3 = jax.random.uniform(ko3, (len(sel_levels), N3, C), dtype=jnp.float32)
    targets3 = jax.random.uniform(kt3, (L, N3, C), dtype=jnp.float32)
    loss3 = jax.block_until_ready(
        mse_per_rank(preds3, targets3, selected_levels=sel_levels, tile_rows=8))
    sel3 = [1, 4, 6]
    ref3 = jnp.mean(jnp.stack(
        [jnp.mean((preds3[i] - targets3[sel3[i]]) ** 2)
         for i in range(len(sel_levels))]))
    assert jnp.allclose(loss3, ref3, rtol=1e-5, atol=1e-6), (loss3, ref3)

    # --- Test 4: N*C not a multiple of 128 (zero-pad fallback path). ---
    N4, C4 = 8, 10
    ko4, kt4 = jax.random.split(k4)
    ok4 = jax.random.split(ko4, L)
    outputs4 = [jax.random.uniform(ok4[i], (N4, C4), dtype=jnp.float32)
                for i in range(L)]
    targets4 = jax.random.uniform(kt4, (L, N4, C4), dtype=jnp.float32)
    loss4 = jax.block_until_ready(mse_per_rank(outputs4, targets4))
    ref4 = jnp.mean(jnp.stack(
        [jnp.mean((outputs4[i] - targets4[i]) ** 2) for i in range(L)]))
    assert jnp.allclose(loss4, ref4, rtol=1e-5, atol=1e-6), (loss4, ref4)

    print("KERNEL_OK")
</pallas_src>

<mosaic_0001>
module attributes {stable_mosaic.version = 11 : i64} {
  func.func @_sq_err_partial_kernel(%arg0: i32, %arg1: i32, %arg2: memref<7xi32, #tpu.memory_space<smem>>, %arg3: memref<1x1x128xf32, #tpu.memory_space<vmem>>, %arg4: memref<1x1x128xf32, #tpu.memory_space<vmem>>, %arg5: memref<1x1x1x128xf32, #tpu.memory_space<vmem>>) attributes {dimension_semantics = [#tpu.dimension_semantics<parallel>, #tpu.dimension_semantics<parallel>], iteration_bounds = array<i64: 7, 1>, scalar_prefetch = 1 : i64, scratch_operands = 0 : i64, tpu.core_type = #tpu.core_type<tc>, window_params = [{transform_indices = @transform_0, window_bounds = array<i64: 1, 1, 128>}, {transform_indices = @transform_1, window_bounds = array<i64: 1, 1, 128>}, {transform_indices = @transform_2, window_bounds = array<i64: 1, 1, 1, 128>}]} {
    %c0 = arith.constant 0 : index
    %c0_0 = arith.constant 0 : index
    %c0_1 = arith.constant 0 : index
    %0 = vector.load %arg3[%c0, %c0_0, %c0_1] : memref<1x1x128xf32, #tpu.memory_space<vmem>>, vector<1x1x128xf32>
    %1 = vector.shape_cast %0 : vector<1x1x128xf32> to vector<1x128xf32>
    %c0_2 = arith.constant 0 : index
    %c0_3 = arith.constant 0 : index
    %c0_4 = arith.constant 0 : index
    %2 = vector.load %arg4[%c0_2, %c0_3, %c0_4] : memref<1x1x128xf32, #tpu.memory_space<vmem>>, vector<1x1x128xf32>
    %3 = vector.shape_cast %2 : vector<1x1x128xf32> to vector<1x128xf32>
    %4 = arith.subf %1, %3 : vector<1x128xf32>
    %5 = arith.mulf %4, %4 : vector<1x128xf32>
    %cst = arith.constant dense<0.000000e+00> : vector<128xf32>
    %6 = vector.multi_reduction <add>, %5, %cst [0] : vector<1x128xf32> to vector<128xf32>
    %7 = vector.shape_cast %6 : vector<128xf32> to vector<1x128xf32>
    %c0_5 = arith.constant 0 : index
    %c0_6 = arith.constant 0 : index
    %c0_7 = arith.constant 0 : index
    %c0_8 = arith.constant 0 : index
    %8 = vector.load %arg5[%c0_5, %c0_6, %c0_7, %c0_8] : memref<1x1x1x128xf32, #tpu.memory_space<vmem>>, vector<1x1x1x128xf32>
    %9 = vector.shape_cast %8 : vector<1x1x1x128xf32> to vector<1x128xf32>
    %10 = vector.shape_cast %7 : vector<1x128xf32> to vector<1x1x1x128xf32>
    tpu.vector_store %arg5[%c0_5, %c0_6, %c0_7, %c0_8], %10 {strides = array<i32>} : memref<1x1x1x128xf32, #tpu.memory_space<vmem>>, vector<1x1x1x128xf32>,
    return
  }
  func.func @transform_0(%arg0: i32, %arg1: i32, %arg2: memref<7xi32, #tpu.memory_space<smem>>) -> (i32, i32, i32) {
    %c0_i32 = arith.constant 0 : i32
    %c0_i32_0 = arith.constant 0 : i32
    return %arg0, %arg1, %c0_i32 : i32, i32, i32
  }
  func.func @transform_1(%arg0: i32, %arg1: i32, %arg2: memref<7xi32, #tpu.memory_space<smem>>) -> (i32, i32, i32) {
    %0 = arith.index_cast %arg0 : i32 to index
    %1 = memref.load %arg2[%0] : memref<7xi32, #tpu.memory_space<smem>>
    %c0_i32 = arith.constant 0 : i32
    %c0_i32_0 = arith.constant 0 : i32
    return %1, %arg1, %c0_i32 : i32, i32, i32
  }
  func.func @transform_2(%arg0: i32, %arg1: i32, %arg2: memref<7xi32, #tpu.memory_space<smem>>) -> (i32, i32, i32, i32) {
    %c0_i32 = arith.constant 0 : i32
    %c0_i32_0 = arith.constant 0 : i32
    %c0_i32_1 = arith.constant 0 : i32
    return %arg0, %arg1, %c0_i32, %c0_i32_0 : i32, i32, i32, i32
  }
}

</mosaic_0001>

<bundles_post_ra>
// kernel: tpu_custom_call.1
= control target key start
LH: loop header
LB: loop body
LE: loop exit
PB: predicated region body
PF: predicated region fallthrough
CT: control target
= control target key end

     0   :  { %s722_s0 = inlined_call_operand.hbm [shape: s32[7], index: 0, kind: input, shape index: {}]   ;;  %s723_s1 = inlined_call_operand.hbm [shape: f32[7,1,128], index: 1, kind: input, shape index: {}]   ;;  %s724_s2 = inlined_call_operand.vmem [shape: f32[7,1,128], index: 2, kind: input, shape index: {}]   ;;  %s725_s3 = inlined_call_operand.hbm [shape: f32[7,1,1,128], index: 3, kind: output, shape index: {}]  }
   0x1   :  { %s386_s14 = scalar_lea.hbm %s722_s0, 16 }
   0x2   :  { %p387_p0 = scmp.ne.s32.totalorder %s722_s0, %s386_s14  ;;  %p390_p1 = scmp.lt.u32.totalorder %s386_s14, %s722_s0 }
   0x4   :  { %p392_p2 = pnand %p390_p1, %p387_p0 }
   0x6   :  { %395 = shalt.err (!%p392_p2)  }
   0x7   :  { %s512_s19 = smov [#allocation3]  }
   0x8   :  { %9 = dma.hbm_to_smem %s722_s0, 16, %s512_s19, [#allocation2] }
   0x9   :  { %478 = dma.done.wait [#allocation2], 16 }
   0xa   :  { %479 = vsyncadd [#allocation2], 4294967280 }
   0xb   :  { %11 = sfence }
   0xc   :  { %12 = vsyncpa [#allocation5], 0 }
   0xd   :  { %14 = vsyncpa [#allocation5 + $0x1], 0 }
   0xe   :  { %15 = vsyncpa [#allocation6], 0 }
   0xf   :  { %17 = vsyncpa [#allocation6 + $0x1], 0  ;;  %s547_s22 = smov 0   ;;  %s549_s23 = smov 0  }
  0x10   :  { %s551_s24 = smov 0   ;;  %s553_s25 = smov 0  }
  0x11   :  { %s555_s26 = smov 0   ;;  %s557_s27 = smov 0  }
  0x12 LB: > { %s314_s0 = sadd.s32 4294967295, %s510_s27   ;;  %s315_s28 = sadd.s32 4294967294, %s510_s27   ;;  %s510_s27 = sphi %s557_s27, %s23_s27   ;;  %s506_s26 = sphi %s555_s26, %s740_s26   ;;  %s502_s25 = sphi %s553_s25, %s739_s25   ;;  %s498_s24 = sphi %s551_s24, %s738_s24   ;;  %s494_s23 = sphi %s549_s23, %s737_s23   ;;  %s490_s22 = sphi %s547_s22, %s736_s22  }
  0x13   : > { %s35_s29 = sadd.s32 1, %s506_s26  ;;  %s44_s30 = sadd.s32 1, %s498_s24 }
  0x14   : > { %p37_p3 = scmp.ge.s32.totalorder %s35_s29, 7  ;;  %p51_p4 = scmp.ne.s32.totalorder %s498_s24, %s494_s23 }
  0x15   : > { %p52_p5 = scmp.eq.s32.totalorder %s510_s27, 0  ;;  %p57_p6 = scmp.ne.s32.totalorder %s494_s23, %s490_s22 }
  0x16   : > { %s742_s29 = smov (%p37_p3, %s35_s29), 0  ;;  %p58_p8 = scmp.eq.s32.totalorder %s314_s0, 0 }
  0x17   : > { %p588_p7 = por %p52_p5, %p51_p4  ;;  %s39_s5 = ssub.s32 %s506_s26, %s742_s29 }
  0x18   : > { %p113_p9 = scmp.eq.s32.totalorder %s314_s0, 6  ;;  %p42_p10 = scmp.eq.s32.totalorder %s39_s5, 0 }
  0x19   : > { %p594_p11 = por %p58_p8, %p57_p6  ;;  %p119_p13 = scmp.eq.s32.totalorder %s315_s28, 6 }
  0x1a   : > { %p598_p12 = por %p113_p9, %p51_p4  ;;  %p335_p1 = scmp.lt.s32.totalorder %s510_s27, 7 }
  0x1b   : > { %s603_s8 = scalar_select %p42_p10, %s498_s24, %s44_s30  }
  0x1c   : > { %s729_s7 = scalar_select %p598_p12, 1, 0 }
  0x1d   : > { %p605_p0 = por %p119_p13, %p57_p6  ;;  %s139_s10 = sand.u32 1, %s498_s24  }
  0x1e   : > { %s318_s11 = sshll.u32 %s506_s26, 4  ;;  %s142_s12 = scalar_lea.vmem [#allocation4], %s139_s10 }
  0x1f   : > { %s730_s9 = scalar_select %p605_p0, 1, 0 }
  0x20   : > { %s150_s13 = sshll.u32 %s142_s12, 4  ;;  %s615_s16 = scalar_lea.hbm %s723_s1, %s318_s11  ;;  %s617_s13 = int_to_ptr.vmem [resolvable:$true] %s150_s13 }
  0x21   : > { %p621_p2 = pnand %p335_p1, %p588_p7  ;;  %s140_s18 = scalar_lea.sflag [#allocation5], %s139_s10 }
  0x22   : > { %s396_s19 = scalar_lea.hbm %s615_s16, 16  ;;  %s401_s0 = scalar_lea.hbm %s723_s1, 112 }
  0x23   : > { %p397_p5 = scmp.ne.s32.totalorder %s615_s16, %s396_s19  ;;  %p398_p6 = pneg %p621_p2 }
  0x24   : > { %p402_p7 = scmp.lt.u32.totalorder %s615_s16, %s723_s1  ;;  %p403_p10 = scmp.lt.u32.totalorder %s401_s0, %s396_s19 }
  0x25   : > { %p399_p8 = pnand %p398_p6, %p397_p5  ;;  %p405_p1 = scmp.lt.u32.totalorder %s396_s19, %s615_s16 }
  0x26   : > { %p404_p13 = por %p403_p10, %p402_p7 }
  0x27   : > { %p400_p9 = pneg %p399_p8 }
  0x28   : > { %p406_p3 = por %p405_p1, %p404_p13 }
  0x2a   : > { %p407_p4 = pnand %p406_p3, %p400_p9 }
  0x2c   : > { %410 = shalt.err (!%p407_p4)
}
  0x2d   : > { %s411_s4 = scalar_lea.vmem %s617_s13, 16  ;;  %s513_s5 = smov [#allocation4]  }
  0x2e   : > { %p412_p5 = scmp.ne.s32.totalorder %s617_s13, %s411_s4  ;;  %s416_s10 = sshll.u32 %s513_s5, 4  ;;  %s417_s10 = int_to_ptr.vmem [resolvable:$false] %s416_s10 }
  0x2f   : > { %s418_s11 = scalar_lea.vmem %s417_s10, 32  ;;  %p419_p12 = scmp.lt.s32.totalorder %s617_s13, %s417_s10 }
  0x30   : > { %p414_p8 = pnand %p412_p5, %p398_p6  ;;  %p420_p7 = scmp.lt.s32.totalorder %s418_s11, %s411_s4 }
  0x32   : > { %p415_p0 = pneg %p414_p8  ;;  %p421_p10 = por %p420_p7, %p419_p12 }
  0x34   : > { %p422_p13 = pnand %p421_p10, %p415_p0 }
  0x36   : > { %425 = shalt.err (!%p422_p13)
}
  0x37   : > { %330 = dma.hbm_to_vmem [thread:$0]  (!%p621_p2), %s615_s16, 16, %s617_s13, %s140_s18  }
  0x38   : > { %p732_p3 = scmp.lt.s32.totalorder %s510_s27, 8  ;;  %p733_p4 = scmp.ge.s32.totalorder %s510_s27, 1 }
  0x3a   : > { %p167_p6 = pnand %p733_p4, %p732_p3 }
  0x3b   : > { %s657_s12 = sand.u32 (!%p167_p6), 1, %s494_s23  }
  0x3c   : > { %170 = sbr.rel (%p167_p6) target bundleno = 97 (0x61), region = 28  ;;  %s173_s14 = scalar_lea.sflag (!%p167_p6), [#allocation5], %s657_s12 }
  0x3d   : > { %s175_s15 = scalar_lea.vmem (!%p167_p6), [#allocation4], %s657_s12 }
  0x43   : > { %481 = dma.done.wait (%p594_p11), %s173_s14, 16  }
  0x44   : > { %483 = vsyncadd (%p594_p11), %s173_s14, 4294967280  ;;  %s201_s13 = sld [smem:[#allocation3 + %s502_s25]]  ;;  %v209_v0 = vld [vmem:[%s175_s15] sm:$0x1]  ;;  %s200_s19 = scalar_lea.vmem [#allocation7], %s657_s12 }
  0x45   : > { %s229_s20 = sshll.u32 %s200_s19, 4  ;;  %s320_s21 = sshll.u32 %s502_s25, 4  ;;  %s671_s20 = int_to_ptr.vmem [resolvable:$true] %s229_s20 }
  0x46   : > { %s676_s28 = scalar_lea.hbm %s725_s3, %s320_s21  ;;  %s216_s30 = scalar_lea.sflag [#allocation6], %s657_s12 }
  0x47   : > { %s426_s4 = scalar_lea.vmem %s671_s20, 16  ;;  %p734_p0 = scmp.ne.s32.totalorder %s729_s7, 0 }
  0x48   : > { %p427_p11 = scmp.ne.s32.totalorder %s671_s20, %s426_s4  ;;  %s514_s25 = smov [#allocation7]  }
  0x49   : > { %s430_s5 = sshll.u32 %s514_s25, 4  ;;  %s431_s5 = int_to_ptr.vmem [resolvable:$false] %s430_s5 }
  0x4a   : > { %p202_p12 = scmp.lt.s32.totalorder %s201_s13, 6  ;;  %p428_p2 = pnand %p427_p11, %p734_p0 }
  0x4b   : > { %s432_s10 = scalar_lea.vmem %s431_s5, 32  ;;  %p433_p1 = scmp.lt.s32.totalorder %s671_s20, %s431_s5 }
  0x4c   : > { %s744_s13 = smov (!%p202_p12, %s201_s13), 6  ;;  %p429_p9 = pneg %p428_p2 }
  0x4d   : > { %s207_s18 = scalar_lea.vmem %s724_s2, %s744_s13  ;;  %p434_p5 = scmp.lt.s32.totalorder %s432_s10, %s426_s4 }
  0x4e   : > { %v210_v1 = vld [vmem:[%s207_s18] sm:$0x1] }
  0x4f   : > { %v211_v2 = vsub.f32 %v209_v0, %v210_v1  ;;  %p435_p8 = por %p434_p5, %p433_p1 }
  0x51   : > { %v212_v3 = vmul.f32 %v211_v2, %v211_v2  ;;  %p436_p7 = pnand %p435_p8, %p429_p9 }
  0x53   : > { %214 = vst [vmem:[%s200_s19] sm:$0x1] %v212_v3 }
  0x54   : > { %439 = shalt.err (!%p436_p7)
}
  0x55   : > { %s440_s11 = scalar_lea.hbm %s676_s28, 16  ;;  %s444_s15 = scalar_lea.hbm %s725_s3, 112 }
  0x56   : > { %p441_p10 = scmp.ne.s32.totalorder %s676_s28, %s440_s11  ;;  %p445_p4 = scmp.lt.u32.totalorder %s676_s28, %s725_s3 }
  0x57   : > { %p446_p6 = scmp.lt.u32.totalorder %s444_s15, %s440_s11  ;;  %p448_p11 = scmp.lt.u32.totalorder %s440_s11, %s676_s28 }
  0x58   : > { %p442_p13 = pnand %p441_p10, %p734_p0 }
  0x59   : > { %p447_p12 = por %p446_p6, %p445_p4 }
  0x5a   : > { %p443_p3 = pneg %p442_p13 }
  0x5b   : > { %p449_p2 = por %p448_p11, %p447_p12 }
  0x5d   : > { %p450_p9 = pnand %p449_p2, %p443_p3 }
  0x5f   : > { %453 = shalt.err (!%p450_p9)
}
  0x60   : > { %325 = dma.vmem_to_hbm [thread:$0]  (%p734_p0), %s671_s20, 16, %s676_s28, %s216_s30  }
  0x61 PF: > { %p336_p1 = scmp.ge.s32.totalorder %s510_s27, 2  ;;  %s241_s17 = sand.u32 1, %s490_s22  }
  0x62   : > { %p735_p5 = scmp.ne.s32.totalorder %s730_s9, 0  ;;  %s242_s18 = scalar_lea.sflag [#allocation6], %s241_s17 }
  0x64   : > { %p332_p8 = pnand %p336_p1, %p735_p5 }
  0x66   : > { %485 = dma.done.wait (!%p332_p8), %s242_s18, 16  }
  0x67   : > { %487 = vsyncadd (!%p332_p8), %s242_s18, 4294967280  ;;  %s23_s27 = sadd.s32 1, %s510_s27   ;;  %s736_s22 = smov %s494_s23 }
  0x68   : > { %p20_p7 = scmp.ge.s32.totalorder %s23_s27, 9   ;;  %s737_s23 = smov %s498_s24 }
  0x69   : > { %s738_s24 = smov %s603_s8  ;;  %s739_s25 = smov %s506_s26 }
  0x6a   : > { %s740_s26 = smov %s742_s29  ;;  %22 = sbr.rel (!%p20_p7) target bundleno = 18 (0x12), region = 76 }
  0x71   :  { %246 = vsyncpa [#allocation5], 1 }
  0x72   :  { %248 = vsyncpa [#allocation5 + $0x1], 1 }
  0x73   :  { %249 = vsyncpa [#allocation6], 1 }
  0x74   :  { %251 = vsyncpa [#allocation6 + $0x1], 1 }

</bundles_post_ra>
